<compile_context>
chip_gen: v6e
topology: v6e:2x2x1
jax: 0.10.0
libtpu: 0.0.40
codegen_flags: <defaults>
</compile_context>

<pallas_src>
import functools

import jax
import jax.numpy as jnp
from jax.experimental import pallas as pl
from jax.experimental.pallas import tpu as pltpu


_VMEM_LIMIT_BYTES = 48 * 1024 * 1024     # > 16/32 MiB default scoped limits, < v7x 64 MiB physical
_TARGET_BLOCK_BYTES = 2 * 1024 * 1024    # ~2 MiB per x block (double-buffered in/out ~= 8-10 MiB)


def _pick_tile(dim, align, target):
    """Largest multiple of `align` that divides `dim` and is <= `target`.

    Falls back to the full dimension (always legal for a BlockSpec) when `dim`
    is not `align`-aligned or no suitable divisor exists.  Using exact divisors
    means no tail tiles and no silently dropped rows.
    """
    if dim <= 0 or dim % align != 0:
        return dim
    t = min(dim, max(align, (target // align) * align))
    while t >= align:
        if dim % t == 0:
            return t
        t -= align
    return dim


# ---------------------------------------------------------------------------
# Kernel 1: spatial-sum reduction over the lane (spatial) axis.
# Grid: (row tiles of B*C  [parallel], column tiles of S  [arbitrary, last]).
# The (TR, 1) f32 output block is the accumulator (same block across j).
# ---------------------------------------------------------------------------
def _sum_kernel(x_ref, sum_ref):
    @pl.when(pl.program_id(1) == 0)
    def _():
        sum_ref[...] = jnp.zeros_like(sum_ref)

    sum_ref[...] += jnp.sum(x_ref[...].astype(jnp.float32), axis=1, keepdims=True)


# ---------------------------------------------------------------------------
# Kernel 2: elementwise hot path  out = max_j (x * a_j + b_j).
# Coefficients (TR, 2k) are loaded once per grid step; x / out blocks are
# lane-dense (TR, TC) tiles of the (B*C, S) view.
# ---------------------------------------------------------------------------
def _apply_kernel(x_ref, coef_ref, o_ref, *, k):
    x = x_ref[...].astype(jnp.float32)           # (TR, TC)
    coef = coef_ref[...].astype(jnp.float32)     # (TR, 2k) hoisted load

    out = x * coef[:, 0:1] + coef[:, k:k + 1]
    for j in range(1, k):
        out = jnp.maximum(out, x * coef[:, j:j + 1] + coef[:, k + j:k + j + 1])
    o_ref[...] = out.astype(o_ref.dtype)


# ---------------------------------------------------------------------------
# Wrapper.  Params use PyTorch Linear conventions:
#   w1: (C//r, C)   b1: (C//r,)   w2: (2k*C, C//r)   b2: (2k*C,)
# Accepts x of shape (B, C, ...spatial) -> covers conv_type '1d' and '2d'.
# ---------------------------------------------------------------------------
def dyrelu_b(x, params, *, k=2):
    w1, b1, w2, b2 = params
    B, C = x.shape[0], x.shape[1]
    assert w1.shape[1] == C, "channel mismatch between x and fc1 weight"
    spatial = 1
    for d in x.shape[2:]:
        spatial *= int(d)

    BC, S = B * C, spatial
    x2d = x.reshape(BC, S)                       # free view of the NCHW buffer
    itemsize = jnp.dtype(x.dtype).itemsize

    tc = _pick_tile(S, 128, 2048)                                        # lane tile
    tr = _pick_tile(BC, 8, max(8, _TARGET_BLOCK_BYTES // max(1, tc * itemsize)))
    grid = (BC // tr, S // tc)

    # --- pass 1: spatial sums (Pallas) -------------------------------------
    sums = pl.pallas_call(
        _sum_kernel,
        out_shape=jax.ShapeDtypeStruct((BC, 1), jnp.float32),
        grid=grid,
        in_specs=[pl.BlockSpec((tr, tc), lambda i, j: (i, j))],
        out_specs=pl.BlockSpec((tr, 1), lambda i, j: (i, 0)),
        compiler_params=pltpu.CompilerParams(
            dimension_semantics=("parallel", "arbitrary"),
            vmem_limit_bytes=_VMEM_LIMIT_BYTES),
    )(x2d)

    # --- tiny FC path (plain JAX, runs once) --------------------------------
    theta = sums.reshape(B, C).astype(jnp.float32) * (1.0 / S)           # mean
    h = jnp.maximum(theta @ w1.T + b1, 0.0)                              # fc1 + relu
    t = h @ w2.T + b2                                                    # fc2 (single stacked matmul)
    t = 2.0 * jax.nn.sigmoid(t) - 1.0                                    # (B, 2k*C)
    lambdas = jnp.array([1.0] * k + [0.5] * k, jnp.float32)
    init_v = jnp.array([1.0] + [0.0] * (2 * k - 1), jnp.float32)
    coefs = (t.reshape(B, C, 2 * k) * lambdas + init_v).reshape(BC, 2 * k)

    # --- pass 2: out = max_j (x * a_j + b_j) (Pallas) ------------------------
    out2d = pl.pallas_call(
        functools.partial(_apply_kernel, k=k),
        out_shape=jax.ShapeDtypeStruct((BC, S), x.dtype),
        grid=grid,
        in_specs=[
            pl.BlockSpec((tr, tc), lambda i, j: (i, j)),
            pl.BlockSpec((tr, 2 * k), lambda i, j: (i, 0)),
        ],
        out_specs=pl.BlockSpec((tr, tc), lambda i, j: (i, j)),
        compiler_params=pltpu.CompilerParams(
            dimension_semantics=("parallel", "parallel"),
            vmem_limit_bytes=_VMEM_LIMIT_BYTES),
    )(x2d, coefs)

    return out2d.reshape(x.shape)


# ---------------------------------------------------------------------------
# Deterministic parameter init (PyTorch Linear shapes / uniform init ranges).
# ---------------------------------------------------------------------------
def init_params(key, channels, reduction=4, k=2):
    C = channels
    Cr = C // reduction
    k1, k2, k3, k4 = jax.random.split(key, 4)

    lim1 = 1.0 / (C ** 0.5)
    w1 = jax.random.uniform(k1, (Cr, C), jnp.float32, -lim1, lim1)
    b1 = jax.random.uniform(k2, (Cr,), jnp.float32, -lim1, lim1)

    lim2 = 1.0 / (Cr ** 0.5)
    w2 = jax.random.uniform(k3, (2 * k * C, Cr), jnp.float32, -lim2, lim2)
    b2 = jax.random.uniform(k4, (2 * k * C,), jnp.float32, -lim2, lim2)
    return w1, b1, w2, b2


# ---------------------------------------------------------------------------
# Pure-JAX reference mirroring the PyTorch forward (conv_type='2d').
# ---------------------------------------------------------------------------
def dyrelu_b_ref(x, w1, b1, w2, b2, k=2):
    B, C, H, W = x.shape
    theta = jnp.mean(x, axis=-1)
    theta = jnp.mean(theta, axis=-1)                      # (B, C)
    theta = jnp.maximum(theta @ w1.T + b1, 0.0)           # fc1 + relu
    theta = theta @ w2.T + b2                             # fc2
    theta = 2.0 * jax.nn.sigmoid(theta) - 1.0             # (B, 2k*C)
    lambdas = jnp.array([1.0] * k + [0.5] * k, jnp.float32)
    init_v = jnp.array([1.0] + [0.0] * (2 * k - 1), jnp.float32)
    relu_coefs = theta.reshape(-1, C, 2 * k) * lambdas + init_v
    x_perm = jnp.transpose(x, (2, 3, 0, 1))[..., None]    # (H, W, B, C, 1)
    output = x_perm * relu_coefs[:, :, :k] + relu_coefs[:, :, k:]
    result = jnp.max(output, axis=-1)                     # (H, W, B, C)
    return jnp.transpose(result, (2, 3, 0, 1))            # NCHW


if __name__ == "__main__":
    key = jax.random.PRNGKey(0)
    B, C, H, W = 2, 8, 16, 16
    reduction, k = 4, 2

    kx, kp = jax.random.split(key)
    x = jax.random.normal(kx, (B, C, H, W), jnp.float32)
    params = init_params(kp, C, reduction=reduction, k=k)

    out = jax.block_until_ready(dyrelu_b(x, params, k=k))

    ref = dyrelu_b_ref(x, *params, k=k)
    assert out.shape == ref.shape == (B, C, H, W)
    max_err = float(jnp.max(jnp.abs(out - ref)))
    assert jnp.allclose(out, ref, atol=1e-4, rtol=1e-4), f"max_err={max_err}"
    print("KERNEL_OK")
</pallas_src>

<mosaic_0001>
module attributes {stable_mosaic.version = 11 : i64} {
  func.func @_sum_kernel(%arg0: i32, %arg1: i32, %arg2: memref<16x256xf32, #tpu.memory_space<vmem>>, %arg3: memref<16x1xf32, #tpu.memory_space<vmem>>) attributes {dimension_semantics = [#tpu.dimension_semantics<parallel>, #tpu.dimension_semantics<arbitrary>], iteration_bounds = array<i64: 1, 1>, scalar_prefetch = 0 : i64, scratch_operands = 0 : i64, tpu.core_type = #tpu.core_type<tc>, window_params = [{transform_indices = @transform_0, window_bounds = array<i64: 16, 256>}, {transform_indices = @transform_1, window_bounds = array<i64: 16, 1>}]} {
    %c0_i32 = arith.constant 0 : i32
    %0 = arith.cmpi eq, %arg1, %c0_i32 : i32
    %1 = arith.extui %0 : i1 to i32
    %c0_i32_0 = arith.constant 0 : i32
    %2 = arith.cmpi ne, %1, %c0_i32_0 : i32
    scf.if %2 {
      %cst_6 = arith.constant 0.000000e+00 : f32
      %9 = vector.broadcast %cst_6 : f32 to vector<16x1xf32>
      %c0_7 = arith.constant 0 : index
      %c0_8 = arith.constant 0 : index
      %10 = vector.load %arg3[%c0_7, %c0_8] : memref<16x1xf32, #tpu.memory_space<vmem>>, vector<16x1xf32>
      tpu.vector_store %arg3[%c0_7, %c0_8], %9 {strides = array<i32>} : memref<16x1xf32, #tpu.memory_space<vmem>>, vector<16x1xf32>,
    } else {
    }
    %c0 = arith.constant 0 : index
    %c0_1 = arith.constant 0 : index
    %3 = vector.load %arg3[%c0, %c0_1] : memref<16x1xf32, #tpu.memory_space<vmem>>, vector<16x1xf32>
    %c0_2 = arith.constant 0 : index
    %c0_3 = arith.constant 0 : index
    %4 = vector.load %arg2[%c0_2, %c0_3] : memref<16x256xf32, #tpu.memory_space<vmem>>, vector<16x256xf32>
    %cst = arith.constant dense<0.000000e+00> : vector<16xf32>
    %5 = vector.multi_reduction <add>, %4, %cst [1] : vector<16x256xf32> to vector<16xf32>
    %6 = vector.shape_cast %5 : vector<16xf32> to vector<16x1xf32>
    %7 = arith.addf %3, %6 : vector<16x1xf32>
    %c0_4 = arith.constant 0 : index
    %c0_5 = arith.constant 0 : index
    %8 = vector.load %arg3[%c0_4, %c0_5] : memref<16x1xf32, #tpu.memory_space<vmem>>, vector<16x1xf32>
    tpu.vector_store %arg3[%c0_4, %c0_5], %7 {strides = array<i32>} : memref<16x1xf32, #tpu.memory_space<vmem>>, vector<16x1xf32>,
    return
  }
  func.func @transform_0(%arg0: i32, %arg1: i32) -> (i32, i32) {
    %c0_i32 = arith.constant 0 : i32
    return %arg0, %arg1 : i32, i32
  }
  func.func @transform_1(%arg0: i32, %arg1: i32) -> (i32, i32) {
    %c0_i32 = arith.constant 0 : i32
    %c0_i32_0 = arith.constant 0 : i32
    return %arg0, %c0_i32 : i32, i32
  }
}

</mosaic_0001>

<bundles_post_ra>
// kernel: tpu_custom_call.1
= control target key start
LH: loop header
LB: loop body
LE: loop exit
PB: predicated region body
PF: predicated region fallthrough
CT: control target
= control target key end

     0   :  { %6 = vsyncpa [#allocation3], 0  ;;  %s77_s6 = smov [#allocation2]   ;;  %s116_s0 = inlined_call_operand.hbm [shape: f32[16,256], index: 0, kind: input, shape index: {}]   ;;  %s117_s1 = inlined_call_operand.vmem [shape: f32[16,1], index: 1, kind: output, shape index: {}]  }
   0x1   :  { %s12_s7 = sshll.u32 %s77_s6, 4  ;;  %s13_s7 = int_to_ptr.vmem [resolvable:$true] %s12_s7 }
   0x2   :  { %s63_s8 = scalar_lea.vmem %s13_s7, 512  ;;  %p68_p1 = scmp.lt.s32.totalorder %s13_s7, %s13_s7 }
   0x3   :  { %p64_p0 = scmp.ne.s32.totalorder %s13_s7, %s63_s8  ;;  %p69_p2 = scmp.lt.s32.totalorder %s63_s8, %s63_s8 }
   0x5   :  { %p70_p3 = por %p69_p2, %p68_p1 }
   0x7   :  { %p71_p4 = pnand %p70_p3, %p64_p0 }
   0x9   :  { %74 = shalt.err (!%p71_p4)
}
   0xa   :  { %s78_s9 = smov 256   ;;  %s79_s10 = smov 16  }
   0xb   :  { %18 = dma.hbm_to_vmem [thread:$0]  %s116_s0, 512, %s13_s7, [#allocation3], %s78_s9, %s78_s9, %s79_s10  }
   0xc   :  { %75 = dma.done.wait [#allocation3], 512  }
   0xd   :  { %76 = vsyncadd [#allocation3], 4294966784  ;;  %vm26_vm0 = vcmask 7168   ;;  %v80_v0 = vmov 0.0   ;;  %v31_v1 = vld [vmem:[#allocation2] sm:$0xff]  ;;  %v32_v2 = vld [vmem:[#allocation2 + $0x8] sm:$0xff] }
   0xe   :  { %27 = vst.msk [vmem:[%s117_s1] sm:$0xff] %vm26_vm0, %v80_v0  ;;  %28 = vst.msk [vmem:[%s117_s1 + $0x8] sm:$0xff] %vm26_vm0, %v80_v0  ;;  %v33_v3 = vld [vmem:[#allocation2 + $0x10] sm:$0xff]  ;;  %v35_v4 = vadd.f32 %v32_v2, %v31_v1  ;;  %v34_v5 = vld [vmem:[#allocation2 + $0x18] sm:$0xff] }
   0xf   :  { %v38_v6 = vadd.f32 %v34_v5, %v33_v3 }
  0x10   :  { %36 = vadd.xlane.f32.xlu0 %v35_v4 }
  0x14   :  { %39 = vadd.xlane.f32.xlu0 %v38_v6 }
  0x15   :  { %v29_v7 = vld [vmem:[%s117_s1] sm:$0xff]  ;;  %v30_v10 = vld [vmem:[%s117_s1 + $0x8] sm:$0xff] }
  0x99   :  { %v37_v8 = vpop.xlane.xlu0 %36 }
  0x9a   :  { %v41_v9 = vadd.f32 %v37_v8, %v29_v7 }
  0x9c   :  { %44 = vst.msk [vmem:[%s117_s1] sm:$0xff] %vm26_vm0, %v41_v9 }
  0x9d   :  { %v40_v11 = vpop.xlane.xlu0 %39 }
  0x9e   :  { %v42_v12 = vadd.f32 %v40_v11, %v30_v10 }
  0xa0   :  { %45 = vst.msk [vmem:[%s117_s1 + $0x8] sm:$0xff] %vm26_vm0, %v42_v12 }
  0xa1   :  { %50 = vsyncpa [#allocation3], 1 }

</bundles_post_ra>
